<compile_context>
chip_gen: v6e
topology: v6e:2x2x1
jax: 0.10.0
libtpu: 0.0.40
codegen_flags: <defaults>
</compile_context>

<pallas_src>
import functools
import math

import jax
import jax.numpy as jnp
from jax.experimental import pallas as pl
from jax.experimental.pallas import tpu as pltpu

ALPHA = 0.5
TEMPERATURE = 2.0

_MIB = 1 << 20
_F32_TEMPS_PER_ELEM = 8 * 4   # ~8 live f32 (TN, C) temporaries inside the body


def _distill_kernel(s_ref, t_ref, tgt_ref, out_ref, *, alpha, temperature,
                    int_temperature, kl_denom, ce_denom, n_valid_rows):
    # s_ref, t_ref : (TN, C) logits tile (native dtype, e.g. bf16) in VMEM
    # tgt_ref      : (TN, 1) int32 class ids in VMEM
    # out_ref      : (TN, 1) f32 per-row partial loss (already alpha/denom scaled)
    s = s_ref[...].astype(jnp.float32)
    t = t_ref[...].astype(jnp.float32)
    tn, c = s.shape
    inv_temp = 1.0 / temperature

    # Temperature-scaled, max-shifted logits (numerically stable softmax bases).
    s_scaled = s * inv_temp
    t_scaled = t * inv_temp
    s_max = jnp.max(s_scaled, axis=-1, keepdims=True)
    t_max = jnp.max(t_scaled, axis=-1, keepdims=True)
    s_shift = s_scaled - s_max
    t_shift = t_scaled - t_max
    s_exp = jnp.exp(s_shift)                     # EUP pass #1
    t_exp = jnp.exp(t_shift)                     # EUP pass #2
    s_sum = jnp.sum(s_exp, axis=-1, keepdims=True)
    t_sum = jnp.sum(t_exp, axis=-1, keepdims=True)
    log_s_sum = jnp.log(s_sum)
    log_t_sum = jnp.log(t_sum)

    # KL(p_t || p_s) per row at temperature T:
    #   sum_c p_t * (log p_t - log p_s)
    #     = (1/t_sum) * sum_c t_exp*(t_shift - s_shift) + (log s_sum - log t_sum)
    # Exactly one exact reciprocal per ROW (a (TN,1) column, ~1/C of the work,
    # so the approximate EUP reciprocal would buy nothing).
    kl_dot = jnp.sum(t_exp * (t_shift - s_shift), axis=-1, keepdims=True)
    row_kl = kl_dot * pl.reciprocal(t_sum) + (log_s_sum - log_t_sum)  # (TN, 1)

    # Student cross-entropy at T=1 without a third full-tile exp pass and
    # without materializing T * s_shift:
    #   exp(s - max(s)) == exp(T * (s/T - max(s/T))) == s_exp ** T   (T > 0)
    if int_temperature is not None:
        exp1 = s_exp
        for _ in range(int_temperature - 1):     # static unroll; VALU, not EUP
            exp1 = exp1 * s_exp
    else:
        exp1 = jnp.exp(temperature * s_shift)    # non-integer-T fallback
    lse1 = jnp.log(jnp.sum(exp1, axis=-1, keepdims=True))

    # Gather s_shift[row, target[row]] via a lane-iota compare feeding one
    # reduction (no one-hot / log-prob matrix materialized).
    col = jax.lax.broadcasted_iota(jnp.int32, (tn, c), 1)
    tgt = tgt_ref[...]                                            # (TN, 1) int32
    gathered = jnp.sum(jnp.where(col == tgt, s_shift, 0.0),
                       axis=-1, keepdims=True)                    # (TN, 1)
    row_ce = lse1 - temperature * gathered       # = logsumexp(s) - s[target]

    # Fold alpha and both denominators once per row so the wrapper only sums.
    k_kl = (1.0 - alpha) * (temperature * temperature) / kl_denom
    k_ce = alpha / ce_denom
    combined = k_kl * row_kl + k_ce * row_ce                      # (TN, 1)

    # Mask rows beyond the true row count (partial tail tile / block padding).
    # All reductions above are axis=-1 only, so garbage in padded rows never
    # crosses into valid rows; this select zeroes the padded rows themselves.
    row0 = pl.program_id(0) * tn
    rid = row0 + jax.lax.broadcasted_iota(jnp.int32, (tn, 1), 0)
    out_ref[...] = jnp.where(rid < n_valid_rows, combined, 0.0)

    # TODO(synk): the PyTorch module prints loss/student/distill when
    # global_rank == 0; printing & distributed-rank handling stay host-side.


def _vmem_capacity_bytes():
    try:
        return int(pltpu.get_tpu_info().vmem_capacity_bytes)
    except Exception:
        return 64 * _MIB          # conservative (v7x-sized) fallback


def _vmem_limit_bytes():
    # v7x: 64 MiB VMEM per TensorCore -> keep the scoped limit at 32 MiB.
    # v5e/v6e: 128 MiB physical     -> raise the limit so larger row tiles can
    # amortize the ~0.35 us/step grid overhead on lower-bandwidth HBM.
    return 32 * _MIB if _vmem_capacity_bytes() <= 64 * _MIB else 64 * _MIB


def _auto_tile_rows(n_rows, n_classes, in_itemsize, vmem_limit):
    # Working set per tile row:
    #   pipeline buffers : 2 inputs x 2 buffers x C x itemsize  (bf16 -> 4*C*2 B)
    #   body temporaries : ~8 live f32 (TN, C) arrays           (-> 32*C B)
    bytes_per_row = n_classes * (2 * 2 * in_itemsize + _F32_TEMPS_PER_ELEM)
    budget = int(vmem_limit * 0.75)               # headroom for compiler scratch
    tn = budget // max(1, bytes_per_row)
    # 16-aligned: bf16 packs two rows per sublane (avoids retiling on load).
    tn = max(16, min(2048, (tn // 16) * 16))
    # Don't tile past the row count (round DOWN so a block never exceeds the
    # array along the sublane axis; the tail block stays a normal partial block).
    if n_rows >= 16:
        tn = min(tn, (n_rows // 16) * 16)
    # Keep >= 2 grid steps whenever N allows: a 1-step grid has no DMA/compute
    # overlap at all and leaves one v7x TensorCore idle on the parallel axis.
    if n_rows >= 32:
        half = ((n_rows + 1) // 2 + 15) // 16 * 16
        if half < n_rows:
            tn = min(tn, half)
    return int(tn)
    # TODO(synk): for LLM-vocab C (32k-256k) add a trailing "arbitrary" grid
    # axis over classes with an online log-sum-exp accumulator (running max /
    # sum / kl_dot / gathered in VMEM scratch) so (TN, C) tiles stay small on
    # v7x's 64 MiB VMEM; full-C tiles are fine for classifier-sized C.


def distillation_loss(s_logits, t_logits, target, alpha=ALPHA,
                      temperature=TEMPERATURE, tile_rows=None):
    """Fused DistillationLoss forward.
    s_logits, t_logits: (..., C) float (any float dtype, kept native in HBM);
    target: integer labels of shape (...)."""
    orig_shape = s_logits.shape
    C = orig_shape[-1]
    N = int(math.prod(orig_shape[:-1])) if len(orig_shape) > 1 else 1

    # PyTorch KLDivLoss(reduction='batchmean') divides by size(0) of the
    # UN-flattened log-prob input (B for (B, ..., C); literally C for a 1-D
    # (C,) input, which we reproduce).  cross_entropy averages over the N
    # flattened rows.
    kl_denom = float(orig_shape[0])
    ce_denom = float(N)

    s2 = s_logits.reshape(N, C)        # native dtype; cast to f32 inside kernel
    t2 = t_logits.reshape(N, C)
    tgt2 = target.reshape(N, 1).astype(jnp.int32)

    vmem_limit = _vmem_limit_bytes()
    itemsize = jnp.dtype(s_logits.dtype).itemsize
    if tile_rows is None:
        TN = _auto_tile_rows(N, C, itemsize, vmem_limit)
    else:
        TN = max(16, (int(tile_rows) // 16) * 16)
    grid = (pl.cdiv(N, TN),)

    # exp(T*x) computed as exp(x)**T (VALU) for small integer temperatures.
    t_round = int(round(float(temperature)))
    int_temperature = (t_round if (abs(float(temperature) - t_round) < 1e-12
                                   and 1 <= t_round <= 4) else None)

    kernel = functools.partial(
        _distill_kernel,
        alpha=float(alpha),
        temperature=float(temperature),
        int_temperature=int_temperature,
        kl_denom=kl_denom,
        ce_denom=ce_denom,
        n_valid_rows=N,
    )

    per_row = pl.pallas_call(
        kernel,
        out_shape=jax.ShapeDtypeStruct((N, 1), jnp.float32),
        grid=grid,
        in_specs=[
            pl.BlockSpec((TN, C), lambda i: (i, 0)),   # student logits tile
            pl.BlockSpec((TN, C), lambda i: (i, 0)),   # teacher logits tile
            pl.BlockSpec((TN, 1), lambda i: (i, 0)),   # targets tile
        ],
        out_specs=pl.BlockSpec((TN, 1), lambda i: (i, 0)),
        compiler_params=pltpu.CompilerParams(
            dimension_semantics=("parallel",),          # independent row tiles
            vmem_limit_bytes=vmem_limit,
        ),
    )(s2, t2, tgt2)

    # TODO(synk): per-row partials are a lane-thin (N, 1) column (masked
    # stores); writeback is <1% of the bf16 logits read for C >= 128, so the
    # per-tile-scalar / lane-dense output variant is deferred.
    return jnp.sum(per_row)


def _reference(s_logits, t_logits, target, alpha=ALPHA, temperature=TEMPERATURE):
    s = s_logits.astype(jnp.float32)
    t = t_logits.astype(jnp.float32)
    C = s.shape[-1]
    s_logp = jax.nn.log_softmax(s / temperature, axis=-1)
    t_sm = jax.nn.softmax(t / temperature, axis=-1)
    t_logp = jax.nn.log_softmax(t / temperature, axis=-1)
    kl = jnp.sum(t_sm * (t_logp - s_logp)) / s.shape[0]
    distill = kl * temperature ** 2
    s2 = s.reshape(-1, C)
    tgt = target.reshape(-1)
    logp = jax.nn.log_softmax(s2, axis=-1)
    ce = -jnp.mean(jnp.take_along_axis(logp, tgt[:, None], axis=-1))
    return alpha * ce + (1.0 - alpha) * distill


if __name__ == "__main__":
    key = jax.random.PRNGKey(0)
    k1, k2, k3 = jax.random.split(key, 3)

    B, S, C = 2, 13, 128   # N = 26 rows -> exercises a masked partial tail tile
    # Logits kept in bf16 (native training dtype) -> kernel reads bf16 from HBM.
    s_logits = jax.random.normal(k1, (B, S, C), dtype=jnp.float32).astype(jnp.bfloat16)
    t_logits = jax.random.normal(k2, (B, S, C), dtype=jnp.float32).astype(jnp.bfloat16)
    target = jax.random.randint(k3, (B, S), 0, C, dtype=jnp.int32)

    ref = _reference(s_logits, t_logits, target)

    # Forced small tile: grid=(2,) with a partial, masked tail tile.
    loss_tiled = distillation_loss(s_logits, t_logits, target, tile_rows=16)
    jax.block_until_ready(loss_tiled)
    assert jnp.isfinite(loss_tiled), "tiled-path loss is not finite"
    assert jnp.allclose(loss_tiled, ref, rtol=1e-4, atol=1e-4), (loss_tiled, ref)

    # Default generation-aware auto tiling (exact reciprocal is the default,
    # so the tight tolerance applies here too).
    loss_auto = distillation_loss(s_logits, t_logits, target)
    jax.block_until_ready(loss_auto)
    assert jnp.isfinite(loss_auto), "auto-path loss is not finite"
    assert jnp.allclose(loss_auto, ref, rtol=1e-4, atol=1e-4), (loss_auto, ref)

    print("KERNEL_OK")
</pallas_src>

<mosaic_0001>
module attributes {stable_mosaic.version = 11 : i64} {
  func.func @_distill_kernel(%arg0: i32, %arg1: memref<16x128xbf16, #tpu.memory_space<vmem>>, %arg2: memref<16x128xbf16, #tpu.memory_space<vmem>>, %arg3: memref<16x1xi32, #tpu.memory_space<vmem>>, %arg4: memref<16x1xf32, #tpu.memory_space<vmem>>) attributes {dimension_semantics = [#tpu.dimension_semantics<parallel>], iteration_bounds = array<i64: 2>, scalar_prefetch = 0 : i64, scratch_operands = 0 : i64, tpu.core_type = #tpu.core_type<tc>, window_params = [{transform_indices = @transform_0, window_bounds = array<i64: 16, 128>}, {transform_indices = @transform_1, window_bounds = array<i64: 16, 128>}, {transform_indices = @transform_2, window_bounds = array<i64: 16, 1>}, {transform_indices = @transform_3, window_bounds = array<i64: 16, 1>}]} {
    %c0 = arith.constant 0 : index
    %c0_0 = arith.constant 0 : index
    %0 = vector.load %arg1[%c0, %c0_0] : memref<16x128xbf16, #tpu.memory_space<vmem>>, vector<16x128xbf16>
    %1 = arith.extf %0 : vector<16x128xbf16> to vector<16x128xf32>
    %c0_1 = arith.constant 0 : index
    %c0_2 = arith.constant 0 : index
    %2 = vector.load %arg2[%c0_1, %c0_2] : memref<16x128xbf16, #tpu.memory_space<vmem>>, vector<16x128xbf16>
    %3 = arith.extf %2 : vector<16x128xbf16> to vector<16x128xf32>
    %cst = arith.constant 5.000000e-01 : f32
    %4 = vector.broadcast %cst : f32 to vector<16x128xf32>
    %5 = arith.mulf %1, %4 : vector<16x128xf32>
    %cst_3 = arith.constant 5.000000e-01 : f32
    %6 = vector.broadcast %cst_3 : f32 to vector<16x128xf32>
    %7 = arith.mulf %3, %6 : vector<16x128xf32>
    %cst_4 = arith.constant dense<0xFF800000> : vector<16xf32>
    %8 = vector.multi_reduction <maximumf>, %5, %cst_4 [1] : vector<16x128xf32> to vector<16xf32>
    %9 = vector.shape_cast %8 : vector<16xf32> to vector<16x1xf32>
    %cst_5 = arith.constant dense<0xFF800000> : vector<16xf32>
    %10 = vector.multi_reduction <maximumf>, %7, %cst_5 [1] : vector<16x128xf32> to vector<16xf32>
    %11 = vector.shape_cast %10 : vector<16xf32> to vector<16x1xf32>
    %12 = vector.broadcast %9 : vector<16x1xf32> to vector<16x128xf32>
    %13 = arith.subf %5, %12 : vector<16x128xf32>
    %14 = vector.broadcast %11 : vector<16x1xf32> to vector<16x128xf32>
    %15 = arith.subf %7, %14 : vector<16x128xf32>
    %16 = math.exp %13 : vector<16x128xf32>
    %17 = math.exp %15 : vector<16x128xf32>
    %cst_6 = arith.constant dense<0.000000e+00> : vector<16xf32>
    %18 = vector.multi_reduction <add>, %16, %cst_6 [1] : vector<16x128xf32> to vector<16xf32>
    %19 = vector.shape_cast %18 : vector<16xf32> to vector<16x1xf32>
    %cst_7 = arith.constant dense<0.000000e+00> : vector<16xf32>
    %20 = vector.multi_reduction <add>, %17, %cst_7 [1] : vector<16x128xf32> to vector<16xf32>
    %21 = vector.shape_cast %20 : vector<16xf32> to vector<16x1xf32>
    %22 = math.log %19 : vector<16x1xf32>
    %23 = math.log %21 : vector<16x1xf32>
    %24 = arith.subf %15, %13 : vector<16x128xf32>
    %25 = arith.mulf %17, %24 : vector<16x128xf32>
    %cst_8 = arith.constant dense<0.000000e+00> : vector<16xf32>
    %26 = vector.multi_reduction <add>, %25, %cst_8 [1] : vector<16x128xf32> to vector<16xf32>
    %27 = vector.shape_cast %26 : vector<16xf32> to vector<16x1xf32>
    %28 = tpu.reciprocal %21 : vector<16x1xf32> -> vector<16x1xf32>
    %29 = arith.mulf %27, %28 : vector<16x1xf32>
    %30 = arith.subf %22, %23 : vector<16x1xf32>
    %31 = arith.addf %29, %30 : vector<16x1xf32>
    %32 = arith.mulf %16, %16 : vector<16x128xf32>
    %cst_9 = arith.constant dense<0.000000e+00> : vector<16xf32>
    %33 = vector.multi_reduction <add>, %32, %cst_9 [1] : vector<16x128xf32> to vector<16xf32>
    %34 = vector.shape_cast %33 : vector<16xf32> to vector<16x1xf32>
    %35 = math.log %34 : vector<16x1xf32>
    %36 = tpu.iota {dimensions = array<i32: 1>} : vector<16x128xi32>
    %c0_10 = arith.constant 0 : index
    %c0_11 = arith.constant 0 : index
    %37 = vector.load %arg3[%c0_10, %c0_11] : memref<16x1xi32, #tpu.memory_space<vmem>>, vector<16x1xi32>
    %38 = vector.broadcast %37 : vector<16x1xi32> to vector<16x128xi32>
    %39 = arith.cmpi eq, %36, %38 : vector<16x128xi32>
    %cst_12 = arith.constant 0.000000e+00 : f32
    %40 = vector.broadcast %cst_12 : f32 to vector<16x128xf32>
    %41 = arith.select %39, %13, %40 : vector<16x128xi1>, vector<16x128xf32>
    %cst_13 = arith.constant dense<0.000000e+00> : vector<16xf32>
    %42 = vector.multi_reduction <add>, %41, %cst_13 [1] : vector<16x128xf32> to vector<16xf32>
    %43 = vector.shape_cast %42 : vector<16xf32> to vector<16x1xf32>
    %cst_14 = arith.constant 2.000000e+00 : f32
    %44 = vector.broadcast %cst_14 : f32 to vector<16x1xf32>
    %45 = arith.mulf %44, %43 : vector<16x1xf32>
    %46 = arith.subf %35, %45 : vector<16x1xf32>
    %cst_15 = arith.constant 1.000000e+00 : f32
    %47 = vector.broadcast %cst_15 : f32 to vector<16x1xf32>
    %48 = arith.mulf %47, %31 : vector<16x1xf32>
    %cst_16 = arith.constant 0.0192307699 : f32
    %49 = vector.broadcast %cst_16 : f32 to vector<16x1xf32>
    %50 = arith.mulf %49, %46 : vector<16x1xf32>
    %51 = arith.addf %48, %50 : vector<16x1xf32>
    %c16_i32 = arith.constant 16 : i32
    %52 = arith.muli %arg0, %c16_i32 : i32
    %53 = tpu.iota {dimensions = array<i32: 0>} : vector<16x1xi32>
    %54 = vector.broadcast %52 : i32 to vector<16x1xi32>
    %55 = arith.addi %54, %53 : vector<16x1xi32>
    %c26_i32 = arith.constant 26 : i32
    %56 = vector.broadcast %c26_i32 : i32 to vector<16x1xi32>
    %57 = arith.cmpi slt, %55, %56 : vector<16x1xi32>
    %cst_17 = arith.constant 0.000000e+00 : f32
    %58 = vector.broadcast %cst_17 : f32 to vector<16x1xf32>
    %59 = arith.select %57, %51, %58 : vector<16x1xi1>, vector<16x1xf32>
    %c0_18 = arith.constant 0 : index
    %c0_19 = arith.constant 0 : index
    %60 = vector.load %arg4[%c0_18, %c0_19] : memref<16x1xf32, #tpu.memory_space<vmem>>, vector<16x1xf32>
    tpu.vector_store %arg4[%c0_18, %c0_19], %59 {strides = array<i32>} : memref<16x1xf32, #tpu.memory_space<vmem>>, vector<16x1xf32>,
    return
  }
  func.func @transform_0(%arg0: i32) -> (i32, i32) {
    %c0_i32 = arith.constant 0 : i32
    %c0_i32_0 = arith.constant 0 : i32
    return %arg0, %c0_i32 : i32, i32
  }
  func.func @transform_1(%arg0: i32) -> (i32, i32) {
    %c0_i32 = arith.constant 0 : i32
    %c0_i32_0 = arith.constant 0 : i32
    return %arg0, %c0_i32 : i32, i32
  }
  func.func @transform_2(%arg0: i32) -> (i32, i32) {
    %c0_i32 = arith.constant 0 : i32
    %c0_i32_0 = arith.constant 0 : i32
    return %arg0, %c0_i32 : i32, i32
  }
  func.func @transform_3(%arg0: i32) -> (i32, i32) {
    %c0_i32 = arith.constant 0 : i32
    %c0_i32_0 = arith.constant 0 : i32
    return %arg0, %c0_i32 : i32, i32
  }
}

</mosaic_0001>

<bundles_post_ra>
// kernel: tpu_custom_call.1
= control target key start
LH: loop header
LB: loop body
LE: loop exit
PB: predicated region body
PF: predicated region fallthrough
CT: control target
= control target key end

     0   :  { %s500_s12 = smov 0   ;;  %s535_s0 = inlined_call_operand.vmem [shape: bf16[26,128], index: 0, kind: input, shape index: {}]   ;;  %s536_s1 = inlined_call_operand.vmem [shape: bf16[26,128], index: 1, kind: input, shape index: {}]   ;;  %s537_s2 = inlined_call_operand.vmem [shape: s32[26,1], index: 2, kind: input, shape index: {}]   ;;  %s538_s3 = inlined_call_operand.vmem [shape: f32[26,1], index: 3, kind: output, shape index: {}]  }
   0x1 LB: > { %s412_s13 = sadd.s32 4294967295, %s477_s12   ;;  %p416_p0 = scmp.ge.s32.totalorder %s477_s12, 1  ;;  %s477_s12 = sphi %s500_s12, %s13_s12  }
   0x2   : > { %p160_p1 = scmp.lt.s32.totalorder %s477_s12, 3 }
   0x4   : > { %p161_p2 = pnand %p416_p0, %p160_p1 }
   0x5   : > { %s417_s14 = sshll.u32 (!%p161_p2), %s412_s13, 1  ;;  %s425_s26 = sshll.u32 (!%p161_p2), %s412_s13, 4 }
   0x6   : > { %164 = sbr.rel (%p161_p2) target bundleno = 354 (0x162), region = 32  ;;  %p195_p3 = scmp.lt.s32.totalorder (!%p161_p2), %s417_s14, 3 }
   0xb   : > { %v479_v0 = vmov 0   ;;  %s540_s14 = smov (!%p195_p3, %s417_s14), 3  ;;  %v292_v31 = vlaneseq  ;;  %v322_v56 = vstv %s425_s26  ;;  %vm329_vm3 = vcmask 7168  }
   0xc   : > { %446 = vset.pattern.permute.xlu1 %v479_v0  ;;  %445 = vset.pattern.permute.xlu0 %v479_v0  ;;  %s418_s15 = sshll.u32 %s540_s14, 2  ;;  %s422_s22 = sshll.u32 %s540_s14, 3 }
   0xd   : > { %s204_s18 = scalar_lea.vmem %s536_s1, %s418_s15  ;;  %s198_s21 = scalar_lea.vmem %s535_s0, %s418_s15  ;;  %v293_v34 = vand.u32 127, %v292_v31  ;;  %v320_v53 = vshrl.u32 %v292_v31, 7 }
   0xe   : > { %v433_v1 = vld [vmem:[%s204_s18] sm:$0xff]   ;;  %s210_s25 = scalar_lea.vmem %s537_s2, %s422_s22  ;;  %s216_s29 = scalar_lea.vmem %s538_s3, %s422_s22 }
   0xf   : > { %v429_v2 = vld [vmem:[%s198_s21] sm:$0xff]   ;;  %v434_v3 = vunpack.c.l.bf16 %v433_v1  ;;  %v435_v5 = vunpack.c.h.bf16 %v433_v1  ;;  %v295_v11 = vld [vmem:[%s210_s25 + $0x8] sm:$0xff]  ;;  %v321_v63 = vadd.s32 8, %v320_v53  ;;  %v323_v1 = vadd.s32 %v322_v56, %v320_v53 }
  0x10   : > { %v430_v4 = vunpack.c.l.bf16 %v429_v2  ;;  %v431_v6 = vunpack.c.h.bf16 %v429_v2  ;;  %v294_v12 = vld [vmem:[%s210_s25] sm:$0xff] }
  0x11   : > { %v228_v7 = vmul.f32 0.5, %v434_v3  ;;  %v229_v9 = vmul.f32 0.5, %v435_v5  ;;  %vm325_vm2 = vcmp.lt.s32.totalorder %v323_v1, 26 }
  0x12   : > { %v226_v8 = vmul.f32 0.5, %v430_v4  ;;  %v227_v10 = vmul.f32 0.5, %v431_v6 }
  0x13   : > { %234 = vmax.xlane.f32.xlu1 %v228_v7 }
  0x14   : > { %230 = vmax.xlane.f32.xlu0 %v226_v8 }
  0x17   : > { %236 = vmax.xlane.f32.xlu1 %v229_v9 }
  0x18   : > { %232 = vmax.xlane.f32.xlu0 %v227_v10 }
  0x28   : > { %300 = vperm.xlu1 %446, %v295_v11  }
  0x2e   : > { %297 = vperm.xlu0 %445, %v294_v12  }
  0x9c   : > { %v235_v13 = vpop.xlane.xlu1 %234 }
  0x9d   : > { %v231_v14 = vpop.xlane.xlu0 %230  ;;  %v240_v15 = vsub.f32 %v228_v7, %v235_v13  ;;  %v324_v13 = vadd.s32 %v322_v56, %v321_v63 }
  0x9e   : > { %v238_v16 = vsub.f32 %v226_v8, %v231_v14 }
  0x9f   : > { %v246_v17 = vmul.f32 1.442695, %v240_v15  ;;  %vm326_vm4 = vcmp.lt.s32.totalorder %v324_v13, 26 }
  0xa0   : > { %v242_v18 = vmul.f32 1.442695, %v238_v16  ;;  %v237_v19 = vpop.xlane.xlu1 %236  ;;  %v266_v27 = vsub.f32 %v240_v15, %v238_v16 }
  0xa1   : > { %v233_v20 = vpop.xlane.xlu0 %232  ;;  %447 = vpow2.f32 %v246_v17  ;;  %v241_v22 = vsub.f32 %v229_v9, %v237_v19 }
  0xa2   : > { %v239_v21 = vsub.f32 %v227_v10, %v233_v20  ;;  %449 = vpow2.f32 %v242_v18 }
  0xa3   : > { %v248_v24 = vmul.f32 1.442695, %v241_v22 }
  0xa4   : > { %v244_v23 = vmul.f32 1.442695, %v239_v21  ;;  %v301_v36 = vpop.permute.xlu1 %300  ;;  %v267_v39 = vsub.f32 %v241_v22, %v239_v21 }
  0xa5   : > { %vm303_vm1 = vcmp.eq.s32.totalorder %v293_v34, %v301_v36 }
  0xa6   : > { %451 = vpow2.f32 %v244_v23  ;;  %v305_v38 = vsel %vm303_vm1, %v239_v21, 0.0 }
  0xa7   : > { %453 = vpow2.f32 %v248_v24 }
  0xa9   : > { %v298_v33 = vpop.permute.xlu0 %297 }
  0xaa   : > { %vm302_vm0 = vcmp.eq.s32.totalorder %v293_v34, %v298_v33 }
  0xab   : > { %v304_v37 = vsel %vm302_vm0, %v238_v16, 0.0 }
  0xae   : > { %v448_v25 = vpop.eup %447 }
  0xaf   : > { %v450_v26 = vpop.eup %449  ;;  %254 = vadd.xlane.f32.xlu0 %v448_v25  ;;  %v268_v28 = vmul.f32 %v448_v25, %v266_v27 }
  0xb0   : > { %250 = vadd.xlane.f32.xlu1 %v450_v26  ;;  %v282_v32 = vmul.f32 %v450_v26, %v450_v26 }
  0xb3   : > { %v452_v29 = vpop.eup %451  ;;  %270 = vadd.xlane.f32.xlu0 %v268_v28 }
  0xb4   : > { %252 = vadd.xlane.f32.xlu1 %v452_v29  ;;  %v454_v30 = vpop.eup %453  ;;  %v283_v35 = vmul.f32 %v452_v29, %v452_v29 }
  0xb5   : > { %v269_v40 = vmul.f32 %v454_v30, %v267_v39 }
  0xb8   : > { %256 = vadd.xlane.f32.xlu1 %v454_v30 }
  0xbc   : > { %284 = vadd.xlane.f32.xlu1 %v282_v32 }
  0xc0   : > { %286 = vadd.xlane.f32.xlu1 %v283_v35 }
  0xc4   : > { %306 = vadd.xlane.f32.xlu1 %v304_v37 }
  0xc8   : > { %308 = vadd.xlane.f32.xlu1 %v305_v38 }
  0xcc   : > { %272 = vadd.xlane.f32.xlu1 %v269_v40 }
 0x138   : > { %v255_v42 = vpop.xlane.xlu0 %254 }
 0x139   : > { %v251_v41 = vpop.xlane.xlu1 %250  ;;  %455 = vlog2.f32 %v255_v42 }
 0x13a   : > { %457 = vlog2.f32 %v251_v41 }
 0x13b   : > { %459 = vrcp.f32 %v255_v42 }
 0x13c   : > { %v271_v60 = vpop.xlane.xlu0 %270 }
 0x13d   : > { %v253_v43 = vpop.xlane.xlu1 %252 }
 0x141   : > { %v257_v44 = vpop.xlane.xlu1 %256 }
 0x142   : > { %461 = vlog2.f32 %v257_v44 }
 0x145   : > { %v285_v45 = vpop.xlane.xlu1 %284 }
 0x146   : > { %463 = vlog2.f32 %v285_v45  ;;  %v456_v47 = vpop.eup %455 }
 0x147   : > { %465 = vlog2.f32 %v253_v43  ;;  %v458_v48 = vpop.eup %457  ;;  %v263_v51 = vmul.f32 0.6931472, %v456_v47 }
 0x148   : > { %467 = vrcp.f32 %v257_v44  ;;  %v259_v50 = vmul.f32 0.6931472, %v458_v48  ;;  %v460_v52 = vpop.eup %459 }
 0x149   : > { %v287_v46 = vpop.xlane.xlu1 %286  ;;  %v276_v0 = vmul.f32 %v460_v52, %v271_v60 }
 0x14a   : > { %469 = vlog2.f32 %v287_v46  ;;  %v278_v58 = vsub.f32 %v259_v50, %v263_v51 }
 0x14c   : > { %v280_v8 = vadd.f32 %v278_v58, %v276_v0 }
 0x14d   : > { %v307_v49 = vpop.xlane.xlu1 %306 }
 0x14e   : > { %v310_v62 = vmul.f32 2.0, %v307_v49 }
 0x14f   : > { %v462_v55 = vpop.eup %461 }
 0x150   : > { %v265_v4 = vmul.f32 0.6931472, %v462_v55 }
 0x151   : > { %v309_v54 = vpop.xlane.xlu1 %308 }
 0x152   : > { %v311_v11 = vmul.f32 2.0, %v309_v54 }
 0x153   : > { %v464_v57 = vpop.eup %463 }
 0x154   : > { %v466_v59 = vpop.eup %465  ;;  %v289_v61 = vmul.f32 0.6931472, %v464_v57 }
 0x155   : > { %v273_v2 = vpop.xlane.xlu1 %272  ;;  %v468_v3 = vpop.eup %467  ;;  %v261_v7 = vmul.f32 0.6931472, %v466_v59 }
 0x156   : > { %v312_v5 = vsub.f32 %v289_v61, %v310_v62  ;;  %v277_v12 = vmul.f32 %v468_v3, %v273_v2 }
 0x157   : > { %v470_v6 = vpop.eup %469  ;;  %v279_v16 = vsub.f32 %v261_v7, %v265_v4 }
 0x158   : > { %v291_v9 = vmul.f32 0.6931472, %v470_v6  ;;  %v314_v10 = vmul.f32 0.01923077, %v312_v5 }
 0x159   : > { %v281_v19 = vadd.f32 %v279_v16, %v277_v12 }
 0x15a   : > { %v316_v14 = vadd.f32 %v314_v10, %v280_v8  ;;  %v313_v15 = vsub.f32 %v291_v9, %v311_v11 }
 0x15c   : > { %v327_v17 = vsel %vm325_vm2, %v316_v14, 0.0  ;;  %v315_v18 = vmul.f32 0.01923077, %v313_v15 }
 0x15d   : > { %330 = vst.msk [vmem:[%s216_s29] sm:$0xff] %vm329_vm3, %v327_v17 }
 0x15e   : > { %v317_v20 = vadd.f32 %v315_v18, %v281_v19 }
 0x160   : > { %v328_v21 = vsel %vm326_vm4, %v317_v20, 0.0 }
 0x161   : > { %331 = vst.msk [vmem:[%s216_s29 + $0x8] sm:$0xff] %vm329_vm3, %v328_v21 }
 0x162 PF: > { %s13_s12 = sadd.s32 1, %s477_s12  }
 0x163   : > { %p10_p4 = scmp.ge.s32.totalorder %s13_s12, 4  }
 0x165   :  { %12 = sbr.rel (!%p10_p4) target bundleno = 1 (0x1), region = 68 }

</bundles_post_ra>
